<compile_context>
chip_gen: v5e
topology: v5e:2x2
jax: 0.10.0
libtpu: 0.0.40
codegen_flags: <defaults>
</compile_context>

<pallas_src>
import jax
import jax.numpy as jnp
from jax.experimental import pallas as pl
from jax.experimental.pallas import tpu as pltpu

LANE = 128                      # TPU lane width: pad all feature dims to this
ROW_TILE = 1024                 # aggregation output-row (i) tile
U_TILE = 512                    # aggregation contraction (u) tile
VMEM_LIMIT = 32 * 1024 * 1024   # explicit scoped-VMEM budget (safe on all gens)


def _pad_to(v, m):
    return (v + m - 1) // m * m


def _node_tiles(n):
    """Padded node count + (row_tile, u_tile) such that both divide n_pad."""
    n_pad = _pad_to(n, LANE)            # 128-aligned -> unmasked lane stores
    if n_pad <= ROW_TILE:
        return n_pad, n_pad, n_pad
    n_pad = _pad_to(n_pad, ROW_TILE)    # ROW_TILE is a multiple of U_TILE
    return n_pad, ROW_TILE, U_TILE


# ---------------------------------------------------------------------------
# Kernel 1: fused Linear projection + LayerNorm, tiled over node rows.
#   Padded h columns are exactly 0 because the padded columns of w/b are 0,
#   so LN stats only need the column mask on the centered values.  Padded node
#   rows are zeroed via a row mask (defensive; they never contribute anyway
#   because the padded A columns are zero).
# ---------------------------------------------------------------------------
def _make_proj_ln_kernel(h_true, eps=1e-5):
    inv_h = 1.0 / float(h_true)

    def kernel(x_ref, w_ref, b_ref, g_ref, beta_ref, colmask_ref, rowmask_ref,
               o_ref):
        h = jnp.dot(x_ref[...], w_ref[...],
                    preferred_element_type=jnp.float32) + b_ref[...]
        mu = jnp.sum(h, axis=-1, keepdims=True) * inv_h   # true-H mean
        d = (h - mu) * colmask_ref[...]
        var = jnp.sum(d * d, axis=-1, keepdims=True) * inv_h
        y = (h - mu) * jax.lax.rsqrt(var + eps)
        # gamma/beta padded columns are 0 -> padded output columns stay 0.
        o_ref[...] = (y * g_ref[...] + beta_ref[...]) * rowmask_ref[...]

    return kernel


def proj_layernorm(x, w, b, gamma, beta, n_pad, row_tile, eps=1e-5):
    n, din = x.shape
    h_true = w.shape[1]
    din_p = _pad_to(din, LANE)
    h_p = _pad_to(h_true, LANE)

    x_p = jnp.zeros((n_pad, din_p), jnp.float32).at[:n, :din].set(x)
    w_p = jnp.zeros((din_p, h_p), jnp.float32).at[:din, :h_true].set(w)
    b_p = jnp.zeros((1, h_p), jnp.float32).at[0, :h_true].set(b)
    g_p = jnp.zeros((1, h_p), jnp.float32).at[0, :h_true].set(gamma)
    be_p = jnp.zeros((1, h_p), jnp.float32).at[0, :h_true].set(beta)
    colmask = jnp.zeros((1, h_p), jnp.float32).at[0, :h_true].set(1.0)
    rowmask = jnp.zeros((n_pad, 1), jnp.float32).at[:n, 0].set(1.0)

    return pl.pallas_call(
        _make_proj_ln_kernel(h_true, eps),
        out_shape=jax.ShapeDtypeStruct((n_pad, h_p), jnp.float32),
        grid=(n_pad // row_tile,),
        in_specs=[
            pl.BlockSpec((row_tile, din_p), lambda i: (i, 0)),
            pl.BlockSpec((din_p, h_p), lambda i: (0, 0)),
            pl.BlockSpec((1, h_p), lambda i: (0, 0)),
            pl.BlockSpec((1, h_p), lambda i: (0, 0)),
            pl.BlockSpec((1, h_p), lambda i: (0, 0)),
            pl.BlockSpec((1, h_p), lambda i: (0, 0)),
            pl.BlockSpec((row_tile, 1), lambda i: (i, 0)),
        ],
        out_specs=pl.BlockSpec((row_tile, h_p), lambda i: (i, 0)),
        compiler_params=pltpu.CompilerParams(
            dimension_semantics=("parallel",),
            vmem_limit_bytes=VMEM_LIMIT),
    )(x_p, w_p, b_p, g_p, be_p, colmask, rowmask)


# ---------------------------------------------------------------------------
# Kernel 2: lane-packed relation transform.
#   One matmul per row tile against W_pack = [W_root | W_rel_0 | ... ],
#   emitting z_root = h @ W_root + bias (f32) and the lane-packed
#   z_rel = h @ [W_rel_0 | ... | W_rel_{R-1}] (compute dtype) as two outputs.
# ---------------------------------------------------------------------------
def _make_rel_transform_kernel(o_p, compute_dtype):
    def kernel(h_ref, w_ref, b_ref, zroot_ref, zrel_ref):
        z = jnp.dot(h_ref[...], w_ref[...], preferred_element_type=jnp.float32)
        zroot_ref[...] = z[:, :o_p] + b_ref[...]
        zrel_ref[...] = z[:, o_p:].astype(compute_dtype)
    return kernel


def rel_transform(h_pad, w_root, w_rel, bias, row_tile, compute_dtype):
    n_pad, h_p = h_pad.shape
    r, h_true, o_true = w_rel.shape
    o_p = _pad_to(o_true, LANE)

    w_root_p = jnp.zeros((h_p, o_p), jnp.float32).at[:h_true, :o_true].set(w_root)
    w_rel_p = jnp.zeros((r, h_p, o_p), jnp.float32).at[:, :h_true, :o_true].set(w_rel)
    w_pack = jnp.concatenate(
        [w_root_p, jnp.transpose(w_rel_p, (1, 0, 2)).reshape(h_p, r * o_p)],
        axis=1)                                   # (h_p, (R+1)*o_p), lane-packed
    b_p = jnp.zeros((1, o_p), jnp.float32).at[0, :o_true].set(bias)

    return pl.pallas_call(
        _make_rel_transform_kernel(o_p, compute_dtype),
        out_shape=(jax.ShapeDtypeStruct((n_pad, o_p), jnp.float32),
                   jax.ShapeDtypeStruct((n_pad, r * o_p), compute_dtype)),
        grid=(n_pad // row_tile,),
        in_specs=[
            pl.BlockSpec((row_tile, h_p), lambda i: (i, 0)),
            pl.BlockSpec((h_p, (r + 1) * o_p), lambda i: (0, 0)),
            pl.BlockSpec((1, o_p), lambda i: (0, 0)),
        ],
        out_specs=(pl.BlockSpec((row_tile, o_p), lambda i: (i, 0)),
                   pl.BlockSpec((row_tile, r * o_p), lambda i: (i, 0))),
        compiler_params=pltpu.CompilerParams(
            dimension_semantics=("parallel",),
            vmem_limit_bytes=VMEM_LIMIT),
    )(h_pad, w_pack, b_p)


# ---------------------------------------------------------------------------
# Kernel 3: aggregation with resident output accumulator.
#   out = z_root + sum_r (1/deg_r) * (C_r @ z_rel[r])
#   grid = (row tiles ["parallel"], relations, contraction tiles); C_r is raw
#   bf16 edge counts, the f32 per-row scale is applied to each partial matmul.
#   z_rel[r] is selected purely via the lane-block index_map (no host slices).
# ---------------------------------------------------------------------------
def _make_agg_kernel(compute_dtype):
    def kernel(a_ref, zrel_ref, inv_ref, zroot_ref, o_ref):
        @pl.when((pl.program_id(1) == 0) & (pl.program_id(2) == 0))
        def _():
            o_ref[...] = zroot_ref[...]

        a = a_ref[0].astype(compute_dtype)     # bf16 counts (exact); upcast iff f32 path
        o_ref[...] += inv_ref[0] * jnp.dot(a, zrel_ref[...],
                                           preferred_element_type=jnp.float32)
    return kernel


def rgcn_aggregate(counts, inv_deg, z_root, z_rel, row_tile, u_tile,
                   num_relations, compute_dtype):
    n_pad, o_p = z_root.shape
    r = num_relations

    return pl.pallas_call(
        _make_agg_kernel(compute_dtype),
        out_shape=jax.ShapeDtypeStruct((n_pad, o_p), jnp.float32),
        grid=(n_pad // row_tile, r, n_pad // u_tile),
        in_specs=[
            pl.BlockSpec((1, row_tile, u_tile), lambda i, rr, u: (rr, i, u)),
            pl.BlockSpec((u_tile, o_p), lambda i, rr, u: (u, rr)),
            pl.BlockSpec((1, row_tile, 1), lambda i, rr, u: (rr, i, 0)),
            pl.BlockSpec((row_tile, o_p), lambda i, rr, u: (i, 0)),
        ],
        out_specs=pl.BlockSpec((row_tile, o_p), lambda i, rr, u: (i, 0)),
        compiler_params=pltpu.CompilerParams(
            dimension_semantics=("parallel", "arbitrary", "arbitrary"),
            vmem_limit_bytes=VMEM_LIMIT),
    )(counts, z_rel, inv_deg, z_root)


# ---------------------------------------------------------------------------
# Glue: per-relation edge counts (bf16, exact for counts <= 256) + f32 1/deg.
# Matches PyG scatter-mean per relation including multi-edges; padded rows and
# columns stay 0 so padded nodes never contribute.
# ---------------------------------------------------------------------------
def build_count_adjacency(edge_index, edge_type, num_nodes_padded, num_relations):
    src, dst = edge_index[0], edge_index[1]
    counts = jnp.zeros((num_relations, num_nodes_padded, num_nodes_padded),
                       jnp.float32)
    counts = counts.at[edge_type, dst, src].add(1.0)
    deg = jnp.sum(counts, axis=-1, keepdims=True)
    inv_deg = 1.0 / jnp.maximum(deg, 1.0)          # (R, N_pad, 1), f32
    return counts.astype(jnp.bfloat16), inv_deg


# ---------------------------------------------------------------------------
# Full RGCN forward
# ---------------------------------------------------------------------------
def rgcn_forward(params, x, edge_index, idx, edge_type, num_relations,
                 compute_dtype=jnp.bfloat16):
    n = x.shape[0]
    n_pad, row_tile, u_tile = _node_tiles(n)
    counts, inv_deg = build_count_adjacency(edge_index, edge_type, n_pad,
                                            num_relations)

    h = proj_layernorm(x, params["proj_w"], params["proj_b"],
                       params["ln_g"], params["ln_b"], n_pad, row_tile)
    for layer in params["layers"]:
        z_root, z_rel = rel_transform(h, layer["w_root"], layer["w_rel"],
                                      layer["bias"], row_tile, compute_dtype)
        h = rgcn_aggregate(counts, inv_deg, z_root, z_rel, row_tile, u_tile,
                           num_relations, compute_dtype)
    out_dim = params["layers"][-1]["w_root"].shape[1]
    return h[:n, :out_dim][idx]   # glue: strip padding + gather


def init_params(key, input_dim, hidden_dim, output_dim, rel_num, n_layer=2):
    keys = jax.random.split(key, 4 + 3 * n_layer)
    params = {
        "proj_w": jax.random.normal(keys[0], (input_dim, hidden_dim), jnp.float32) * 0.1,
        "proj_b": jax.random.normal(keys[1], (hidden_dim,), jnp.float32) * 0.1,
        "ln_g": jnp.ones((hidden_dim,), jnp.float32),
        "ln_b": jnp.zeros((hidden_dim,), jnp.float32),
        "layers": [],
    }
    for i in range(n_layer):
        din = hidden_dim
        dout = output_dim if i == n_layer - 1 else hidden_dim
        k0, k1, k2 = keys[4 + 3 * i: 7 + 3 * i]
        params["layers"].append({
            "w_rel": jax.random.normal(k0, (rel_num, din, dout), jnp.float32) * 0.1,
            "w_root": jax.random.normal(k1, (din, dout), jnp.float32) * 0.1,
            "bias": jax.random.normal(k2, (dout,), jnp.float32) * 0.1,
        })
    return params


# Plain-JAX reference (mirrors the torch module) for a correctness check.
def rgcn_reference(params, x, edge_index, idx, edge_type, num_relations):
    n = x.shape[0]
    h = x @ params["proj_w"] + params["proj_b"]
    mu = h.mean(-1, keepdims=True)
    var = ((h - mu) ** 2).mean(-1, keepdims=True)
    h = (h - mu) / jnp.sqrt(var + 1e-5) * params["ln_g"] + params["ln_b"]
    src, dst = edge_index[0], edge_index[1]
    for layer in params["layers"]:
        out = h @ layer["w_root"] + layer["bias"]
        for r in range(num_relations):
            a = jnp.zeros((n, n), jnp.float32).at[dst, src].add(
                (edge_type == r).astype(jnp.float32))
            deg = a.sum(-1, keepdims=True)
            a = a / jnp.maximum(deg, 1.0)
            out = out + (a @ h) @ layer["w_rel"][r]
        h = out
    return h[idx]


if __name__ == "__main__":
    key = jax.random.PRNGKey(0)
    k_feat, k_edge, k_type, k_param = jax.random.split(key, 4)

    N, E = 64, 256
    INPUT_DIM, HIDDEN_DIM, OUTPUT_DIM = 16, 32, 16
    REL_NUM, N_LAYER = 3, 2

    x = jax.random.normal(k_feat, (N, INPUT_DIM), jnp.float32)
    edge_index = jax.random.randint(k_edge, (2, E), 0, N, dtype=jnp.int32)
    edge_type = jax.random.randint(k_type, (E,), 0, REL_NUM, dtype=jnp.int32)
    idx = jnp.array([0, 5, 10, 17], dtype=jnp.int32)

    params = init_params(k_param, INPUT_DIM, HIDDEN_DIM, OUTPUT_DIM, REL_NUM, N_LAYER)

    ref = rgcn_reference(params, x, edge_index, idx, edge_type, REL_NUM)

    # Exact f32 path (bf16 counts are exact; everything else f32).
    out_f32 = rgcn_forward(params, x, edge_index, idx, edge_type, REL_NUM,
                           compute_dtype=jnp.float32)
    jax.block_until_ready(out_f32)
    assert out_f32.shape == (idx.shape[0], OUTPUT_DIM)
    assert jnp.allclose(out_f32, ref, rtol=5e-3, atol=5e-3), float(
        jnp.max(jnp.abs(out_f32 - ref)))

    # Default bf16 aggregation operand path (halves HBM traffic / 2x MXU rate).
    out_bf16 = rgcn_forward(params, x, edge_index, idx, edge_type, REL_NUM)
    jax.block_until_ready(out_bf16)
    assert out_bf16.shape == (idx.shape[0], OUTPUT_DIM)
    assert jnp.allclose(out_bf16, ref, rtol=5e-2, atol=5e-2), float(
        jnp.max(jnp.abs(out_bf16 - ref)))

    print("KERNEL_OK")
</pallas_src>

<mosaic_0001>
module attributes {stable_mosaic.version = 11 : i64} {
  func.func @kernel(%arg0: i32, %arg1: memref<128x128xf32, #tpu.memory_space<vmem>>, %arg2: memref<128x128xf32, #tpu.memory_space<vmem>>, %arg3: memref<1x128xf32, #tpu.memory_space<vmem>>, %arg4: memref<1x128xf32, #tpu.memory_space<vmem>>, %arg5: memref<1x128xf32, #tpu.memory_space<vmem>>, %arg6: memref<1x128xf32, #tpu.memory_space<vmem>>, %arg7: memref<128x1xf32, #tpu.memory_space<vmem>>, %arg8: memref<128x128xf32, #tpu.memory_space<vmem>>) attributes {dimension_semantics = [#tpu.dimension_semantics<parallel>], iteration_bounds = array<i64: 1>, scalar_prefetch = 0 : i64, scratch_operands = 0 : i64, tpu.core_type = #tpu.core_type<tc>, window_params = [{transform_indices = @transform_0, window_bounds = array<i64: 128, 128>}, {pipeline_mode = #tpu.pipeline_mode<synchronous>, transform_indices = @transform_1, window_bounds = array<i64: 128, 128>}, {pipeline_mode = #tpu.pipeline_mode<synchronous>, transform_indices = @transform_2, window_bounds = array<i64: 1, 128>}, {pipeline_mode = #tpu.pipeline_mode<synchronous>, transform_indices = @transform_3, window_bounds = array<i64: 1, 128>}, {pipeline_mode = #tpu.pipeline_mode<synchronous>, transform_indices = @transform_4, window_bounds = array<i64: 1, 128>}, {pipeline_mode = #tpu.pipeline_mode<synchronous>, transform_indices = @transform_5, window_bounds = array<i64: 1, 128>}, {transform_indices = @transform_6, window_bounds = array<i64: 128, 1>}, {transform_indices = @transform_7, window_bounds = array<i64: 128, 128>}]} {
    %c0 = arith.constant 0 : index
    %c0_0 = arith.constant 0 : index
    %0 = vector.load %arg1[%c0, %c0_0] : memref<128x128xf32, #tpu.memory_space<vmem>>, vector<128x128xf32>
    %c0_1 = arith.constant 0 : index
    %c0_2 = arith.constant 0 : index
    %1 = vector.load %arg2[%c0_1, %c0_2] : memref<128x128xf32, #tpu.memory_space<vmem>>, vector<128x128xf32>
    %cst = arith.constant dense<0.000000e+00> : vector<128x128xf32>
    %2 = tpu.matmul %0, %1, %cst {dimension_numbers = #tpu.dot_dimension_numbers<[1], [0], [0], [1], [0, 0, 1, 1], [], []>} : vector<128x128xf32>, vector<128x128xf32>, vector<128x128xf32> -> vector<128x128xf32>
    %c0_3 = arith.constant 0 : index
    %c0_4 = arith.constant 0 : index
    %3 = vector.load %arg3[%c0_3, %c0_4] : memref<1x128xf32, #tpu.memory_space<vmem>>, vector<1x128xf32>
    %4 = vector.broadcast %3 : vector<1x128xf32> to vector<128x128xf32>
    %5 = arith.addf %2, %4 : vector<128x128xf32>
    %cst_5 = arith.constant dense<0.000000e+00> : vector<128xf32>
    %6 = vector.multi_reduction <add>, %5, %cst_5 [1] : vector<128x128xf32> to vector<128xf32>
    %7 = vector.shape_cast %6 : vector<128xf32> to vector<128x1xf32>
    %cst_6 = arith.constant 3.125000e-02 : f32
    %8 = vector.broadcast %cst_6 : f32 to vector<128x1xf32>
    %9 = arith.mulf %7, %8 : vector<128x1xf32>
    %10 = vector.broadcast %9 : vector<128x1xf32> to vector<128x128xf32>
    %11 = arith.subf %5, %10 : vector<128x128xf32>
    %c0_7 = arith.constant 0 : index
    %c0_8 = arith.constant 0 : index
    %12 = vector.load %arg6[%c0_7, %c0_8] : memref<1x128xf32, #tpu.memory_space<vmem>>, vector<1x128xf32>
    %13 = vector.broadcast %12 : vector<1x128xf32> to vector<128x128xf32>
    %14 = arith.mulf %11, %13 : vector<128x128xf32>
    %15 = arith.mulf %14, %14 : vector<128x128xf32>
    %cst_9 = arith.constant dense<0.000000e+00> : vector<128xf32>
    %16 = vector.multi_reduction <add>, %15, %cst_9 [1] : vector<128x128xf32> to vector<128xf32>
    %17 = vector.shape_cast %16 : vector<128xf32> to vector<128x1xf32>
    %cst_10 = arith.constant 3.125000e-02 : f32
    %18 = vector.broadcast %cst_10 : f32 to vector<128x1xf32>
    %19 = arith.mulf %17, %18 : vector<128x1xf32>
    %20 = vector.broadcast %9 : vector<128x1xf32> to vector<128x128xf32>
    %21 = arith.subf %5, %20 : vector<128x128xf32>
    %cst_11 = arith.constant 9.99999974E-6 : f32
    %22 = vector.broadcast %cst_11 : f32 to vector<128x1xf32>
    %23 = arith.addf %19, %22 : vector<128x1xf32>
    %24 = math.rsqrt %23 : vector<128x1xf32>
    %25 = vector.broadcast %24 : vector<128x1xf32> to vector<128x128xf32>
    %26 = arith.mulf %21, %25 : vector<128x128xf32>
    %c0_12 = arith.constant 0 : index
    %c0_13 = arith.constant 0 : index
    %27 = vector.load %arg4[%c0_12, %c0_13] : memref<1x128xf32, #tpu.memory_space<vmem>>, vector<1x128xf32>
    %28 = vector.broadcast %27 : vector<1x128xf32> to vector<128x128xf32>
    %29 = arith.mulf %26, %28 : vector<128x128xf32>
    %c0_14 = arith.constant 0 : index
    %c0_15 = arith.constant 0 : index
    %30 = vector.load %arg5[%c0_14, %c0_15] : memref<1x128xf32, #tpu.memory_space<vmem>>, vector<1x128xf32>
    %31 = vector.broadcast %30 : vector<1x128xf32> to vector<128x128xf32>
    %32 = arith.addf %29, %31 : vector<128x128xf32>
    %c0_16 = arith.constant 0 : index
    %c0_17 = arith.constant 0 : index
    %33 = vector.load %arg7[%c0_16, %c0_17] : memref<128x1xf32, #tpu.memory_space<vmem>>, vector<128x1xf32>
    %34 = vector.broadcast %33 : vector<128x1xf32> to vector<128x128xf32>
    %35 = arith.mulf %32, %34 : vector<128x128xf32>
    %c0_18 = arith.constant 0 : index
    %c0_19 = arith.constant 0 : index
    %36 = vector.load %arg8[%c0_18, %c0_19] : memref<128x128xf32, #tpu.memory_space<vmem>>, vector<128x128xf32>
    tpu.vector_store %arg8[%c0_18, %c0_19], %35 {strides = array<i32>} : memref<128x128xf32, #tpu.memory_space<vmem>>, vector<128x128xf32>,
    return
  }
  func.func @transform_0(%arg0: i32) -> (i32, i32) {
    %c0_i32 = arith.constant 0 : i32
    %c0_i32_0 = arith.constant 0 : i32
    return %arg0, %c0_i32 : i32, i32
  }
  func.func @transform_1(%arg0: i32) -> (i32, i32) {
    %c0_i32 = arith.constant 0 : i32
    %c0_i32_0 = arith.constant 0 : i32
    %c0_i32_1 = arith.constant 0 : i32
    return %c0_i32, %c0_i32_0 : i32, i32
  }
  func.func @transform_2(%arg0: i32) -> (i32, i32) {
    %c0_i32 = arith.constant 0 : i32
    %c0_i32_0 = arith.constant 0 : i32
    %c0_i32_1 = arith.constant 0 : i32
    return %c0_i32, %c0_i32_0 : i32, i32
  }
  func.func @transform_3(%arg0: i32) -> (i32, i32) {
    %c0_i32 = arith.constant 0 : i32
    %c0_i32_0 = arith.constant 0 : i32
    %c0_i32_1 = arith.constant 0 : i32
    return %c0_i32, %c0_i32_0 : i32, i32
  }
  func.func @transform_4(%arg0: i32) -> (i32, i32) {
    %c0_i32 = arith.constant 0 : i32
    %c0_i32_0 = arith.constant 0 : i32
    %c0_i32_1 = arith.constant 0 : i32
    return %c0_i32, %c0_i32_0 : i32, i32
  }
  func.func @transform_5(%arg0: i32) -> (i32, i32) {
    %c0_i32 = arith.constant 0 : i32
    %c0_i32_0 = arith.constant 0 : i32
    %c0_i32_1 = arith.constant 0 : i32
    return %c0_i32, %c0_i32_0 : i32, i32
  }
  func.func @transform_6(%arg0: i32) -> (i32, i32) {
    %c0_i32 = arith.constant 0 : i32
    %c0_i32_0 = arith.constant 0 : i32
    return %arg0, %c0_i32 : i32, i32
  }
  func.func @transform_7(%arg0: i32) -> (i32, i32) {
    %c0_i32 = arith.constant 0 : i32
    %c0_i32_0 = arith.constant 0 : i32
    return %arg0, %c0_i32 : i32, i32
  }
}

</mosaic_0001>

<bundles_post_ra>
// kernel: tpu_custom_call.1
= control target key start
LH: loop header
LB: loop body
LE: loop exit
PB: predicated region body
PF: predicated region fallthrough
CT: control target
= control target key end

     0   :  { %12 = vsyncpa [#allocation3], 0  ;;  %s1394_s0 = inlined_call_operand.vmem [shape: f32[128,128], index: 0, kind: input, shape index: {}]   ;;  %s1395_s1 = inlined_call_operand.hbm [shape: f32[128,128], index: 1, kind: input, shape index: {}]   ;;  %s1396_s2 = inlined_call_operand.vmem [shape: f32[1,128], index: 2, kind: input, shape index: {}]   ;;  %s1397_s3 = inlined_call_operand.hbm [shape: f32[1,128], index: 3, kind: input, shape index: {}]   ;;  %s1398_s4 = inlined_call_operand.vmem [shape: f32[1,128], index: 4, kind: input, shape index: {}]   ;;  %s1399_s5 = inlined_call_operand.vmem [shape: f32[1,128], index: 5, kind: input, shape index: {}]   ;;  %s1400_s6 = inlined_call_operand.vmem [shape: f32[128,1], index: 6, kind: input, shape index: {}]   ;;  %s1401_s7 = inlined_call_operand.hbm [shape: f32[128,128], index: 7, kind: output, shape index: {}]  }
   0x1   :  { %13 = vsyncpa [#allocation6], 0 }
   0x2   :  { %14 = vsyncpa [#allocation4], 0  ;;  %s21_s26 = sshll.u32 %s1395_s1, 4  ;;  %s857_s27 = smov [#allocation2]   ;;  %s22_s26 = int_to_ptr.hbm [resolvable:$true] %s21_s26 }
   0x3   :  { %s23_s28 = sshll.u32 %s857_s27, 4  ;;  %s37_s8 = sshll.u32 %s1397_s3, 4  ;;  %s24_s28 = int_to_ptr.vmem [resolvable:$true] %s23_s28  ;;  %s38_s8 = int_to_ptr.hbm [resolvable:$true] %s37_s8 }
   0x4   :  { %s858_s9 = smov 128   ;;  %s859_s10 = smov 8  }
   0x5   :  { %29 = dma.hbm_to_vmem [thread:$0]  %s22_s26, 2048, %s24_s28, [#allocation3], %s858_s9, %s858_s9, %s859_s10  }
   0x6   :  { %s860_s11 = smov [#allocation5]  }
   0x7   :  { %s39_s12 = sshll.u32 %s860_s11, 4  ;;  %s40_s12 = int_to_ptr.vmem [resolvable:$true] %s39_s12 }
   0x8   :  { %42 = dma.hbm_to_vmem [thread:$0]  %s38_s8, 16, %s40_s12, [#allocation6]  }
   0x9   :  { %851 = dma.done.wait [#allocation3], 2048  }
   0xa   :  { %852 = vsyncadd [#allocation3], 4294965248 }
   0xb   :  { %853 = dma.done.wait [#allocation6], 16  }
   0xc   :  { %854 = vsyncadd [#allocation6], 4294967280  ;;  %v88_v0 = vld [vmem:[#allocation2 + $0x78] sm:$0xff]  ;;  %v87_v1 = vld [vmem:[#allocation2 + $0x70] sm:$0xff]  ;;  %v861_v21 = vmov 0   ;;  %s672_s1 = sshll.u32 %s1401_s7, 4  ;;  %s673_s1 = int_to_ptr.hbm [resolvable:$true] %s672_s1 }
   0xd   :  { %93 = vmatpush.msra.mxu0 %v88_v0  ;;  %686 = vmatpush.msra.mxu1 %v88_v0  ;;  %v86_v2 = vld [vmem:[#allocation2 + $0x68] sm:$0xff]  ;;  %v85_v3 = vld [vmem:[#allocation2 + $0x60] sm:$0xff]  ;;  %v84_v4 = vld [vmem:[#allocation2 + $0x58] sm:$0xff] }
   0xe   :  { %688 = vmatpush.msra.mxu3 %v88_v0  ;;  %687 = vmatpush.msra.mxu2 %v88_v0  ;;  %v83_v5 = vld [vmem:[#allocation2 + $0x50] sm:$0xff]  ;;  %v82_v6 = vld [vmem:[#allocation2 + $0x48] sm:$0xff]  ;;  %v81_v7 = vld [vmem:[#allocation2 + $0x40] sm:$0xff] }
   0xf   :  { %94 = vmatpush.msra.mxu0 %v87_v1  ;;  %689 = vmatpush.msra.mxu1 %v87_v1  ;;  %v80_v8 = vld [vmem:[#allocation2 + $0x38] sm:$0xff]  ;;  %v79_v9 = vld [vmem:[#allocation2 + $0x30] sm:$0xff]  ;;  %v78_v10 = vld [vmem:[#allocation2 + $0x28] sm:$0xff] }
  0x10   :  { %691 = vmatpush.msra.mxu3 %v87_v1  ;;  %690 = vmatpush.msra.mxu2 %v87_v1  ;;  %v77_v11 = vld [vmem:[#allocation2 + $0x20] sm:$0xff]  ;;  %v76_v12 = vld [vmem:[#allocation2 + $0x18] sm:$0xff]  ;;  %v75_v13 = vld [vmem:[#allocation2 + $0x10] sm:$0xff] }
  0x11   :  { %95 = vmatpush.msra.mxu0 %v86_v2  ;;  %692 = vmatpush.msra.mxu1 %v86_v2  ;;  %v74_v14 = vld [vmem:[#allocation2 + $0x8] sm:$0xff]  ;;  %v73_v15 = vld [vmem:[#allocation2] sm:$0xff]  ;;  %v540_v22 = vld [vmem:[%s1400_s6 + $0x10] sm:$0xff] }
  0x12   :  { %694 = vmatpush.msra.mxu3 %v86_v2  ;;  %693 = vmatpush.msra.mxu2 %v86_v2  ;;  %v57_v16 = vld [vmem:[%s1394_s0] sm:$0xff]  ;;  %v539_v23 = vld [vmem:[%s1400_s6 + $0x8] sm:$0xff]  ;;  %v541_v28 = vld [vmem:[%s1400_s6 + $0x18] sm:$0xff] }
  0x13   :  { %96 = vmatpush.msra.mxu0 %v85_v3  ;;  %695 = vmatpush.msra.mxu1 %v85_v3  ;;  %v61_v17 = vld [vmem:[%s1394_s0 + $0x20] sm:$0xff]  ;;  %v58_v24 = vld [vmem:[%s1394_s0 + $0x8] sm:$0xff]  ;;  %v59_v31 = vld [vmem:[%s1394_s0 + $0x10] sm:$0xff] }
  0x14   :  { %697 = vmatpush.msra.mxu3 %v85_v3  ;;  %696 = vmatpush.msra.mxu2 %v85_v3  ;;  %v69_v18 = vld [vmem:[%s1394_s0 + $0x60] sm:$0xff]  ;;  %v70_v25 = vld [vmem:[%s1394_s0 + $0x68] sm:$0xff]  ;;  %v71_v32 = vld [vmem:[%s1394_s0 + $0x70] sm:$0xff] }
  0x15   :  { %97 = vmatpush.msra.mxu0 %v84_v4  ;;  %698 = vmatpush.msra.mxu1 %v84_v4  ;;  %v65_v19 = vld [vmem:[%s1394_s0 + $0x40] sm:$0xff]  ;;  %v62_v26 = vld [vmem:[%s1394_s0 + $0x28] sm:$0xff]  ;;  %v63_v33 = vld [vmem:[%s1394_s0 + $0x30] sm:$0xff] }
  0x16   :  { %700 = vmatpush.msra.mxu3 %v84_v4  ;;  %699 = vmatpush.msra.mxu2 %v84_v4  ;;  %v538_v20 = vld [vmem:[%s1400_s6] sm:$0xff]  ;;  %v66_v27 = vld [vmem:[%s1394_s0 + $0x48] sm:$0xff]  ;;  %v67_v34 = vld [vmem:[%s1394_s0 + $0x50] sm:$0xff] }
  0x17   :  { %98 = vmatpush.msra.mxu0 %v83_v5  ;;  %701 = vmatpush.msra.mxu1 %v83_v5  ;;  %v543_v29 = vld [vmem:[%s1400_s6 + $0x28] sm:$0xff]  ;;  %v546_v30 = vld [vmem:[%s1400_s6 + $0x40] sm:$0xff]  ;;  %v545_v36 = vld [vmem:[%s1400_s6 + $0x38] sm:$0xff] }
  0x18   :  { %703 = vmatpush.msra.mxu3 %v83_v5  ;;  %702 = vmatpush.msra.mxu2 %v83_v5  ;;  %v542_v35 = vld [vmem:[%s1400_s6 + $0x20] sm:$0xff]  ;;  %v549_v37 = vld [vmem:[%s1400_s6 + $0x58] sm:$0xff]  ;;  %v544_v42 = vld [vmem:[%s1400_s6 + $0x30] sm:$0xff] }
  0x19   :  { %99 = vmatpush.msra.mxu0 %v82_v6  ;;  %704 = vmatpush.msra.mxu1 %v82_v6  ;;  %v60_v38 = vld [vmem:[%s1394_s0 + $0x18] sm:$0xff]  ;;  %v548_v43 = vld [vmem:[%s1400_s6 + $0x50] sm:$0xff]  ;;  %v547_v44 = vld [vmem:[%s1400_s6 + $0x48] sm:$0xff] }
  0x1a   :  { %706 = vmatpush.msra.mxu3 %v82_v6  ;;  %705 = vmatpush.msra.mxu2 %v82_v6  ;;  %v72_v39 = vld [vmem:[%s1394_s0 + $0x78] sm:$0xff]  ;;  %v550_v45 = vld [vmem:[%s1400_s6 + $0x60] sm:$0xff] }
  0x1b   :  { %100 = vmatpush.msra.mxu0 %v81_v7  ;;  %707 = vmatpush.msra.mxu1 %v81_v7  ;;  %v64_v40 = vld [vmem:[%s1394_s0 + $0x38] sm:$0xff]  ;;  %v743_v46 = vld [vmem:[%s1396_s2] ss:$0 sm:$0xff] }
  0x1c   :  { %709 = vmatpush.msra.mxu3 %v81_v7  ;;  %708 = vmatpush.msra.mxu2 %v81_v7  ;;  %v68_v41 = vld [vmem:[%s1394_s0 + $0x58] sm:$0xff] }
  0x1d   :  { %101 = vmatpush.msra.mxu0 %v80_v8  ;;  %710 = vmatpush.msra.mxu1 %v80_v8 }
  0x1e   :  { %712 = vmatpush.msra.mxu3 %v80_v8  ;;  %711 = vmatpush.msra.mxu2 %v80_v8 }
  0x1f   :  { %102 = vmatpush.msra.mxu0 %v79_v9  ;;  %713 = vmatpush.msra.mxu1 %v79_v9 }
  0x20   :  { %715 = vmatpush.msra.mxu3 %v79_v9  ;;  %714 = vmatpush.msra.mxu2 %v79_v9 }
  0x21   :  { %103 = vmatpush.msra.mxu0 %v78_v10  ;;  %716 = vmatpush.msra.mxu1 %v78_v10 }
  0x22   :  { %718 = vmatpush.msra.mxu3 %v78_v10  ;;  %717 = vmatpush.msra.mxu2 %v78_v10 }
  0x23   :  { %104 = vmatpush.msra.mxu0 %v77_v11  ;;  %719 = vmatpush.msra.mxu1 %v77_v11 }
  0x24   :  { %721 = vmatpush.msra.mxu3 %v77_v11  ;;  %720 = vmatpush.msra.mxu2 %v77_v11 }
  0x25   :  { %105 = vmatpush.msra.mxu0 %v76_v12  ;;  %722 = vmatpush.msra.mxu1 %v76_v12 }
  0x26   :  { %724 = vmatpush.msra.mxu3 %v76_v12  ;;  %723 = vmatpush.msra.mxu2 %v76_v12 }
  0x27   :  { %106 = vmatpush.msra.mxu0 %v75_v13  ;;  %725 = vmatpush.msra.mxu1 %v75_v13 }
  0x28   :  { %727 = vmatpush.msra.mxu3 %v75_v13  ;;  %726 = vmatpush.msra.mxu2 %v75_v13 }
  0x29   :  { %107 = vmatpush.msra.mxu0 %v74_v14  ;;  %728 = vmatpush.msra.mxu1 %v74_v14 }
  0x2a   :  { %730 = vmatpush.msra.mxu3 %v74_v14  ;;  %729 = vmatpush.msra.mxu2 %v74_v14 }
  0x2b   :  { %108 = vmatpush.msra.mxu0 %v73_v15  ;;  %731 = vmatpush.msra.mxu1 %v73_v15 }
  0x2c   :  { %733 = vmatpush.msra.mxu3 %v73_v15  ;;  %109 = vmatmul.f32.vlgmr.msra.gmra.mxu0 %v57_v16 }
  0x2d   :  { %121 = vmatmul.f32.vlgmr.msra.gmra.mxu1 %v61_v17  ;;  %145 = vmatmul.f32.vlgmr.msra.gmra.mxu3 %v69_v18 }
  0x2e   :  { %732 = vmatpush.msra.mxu2 %v73_v15  ;;  %740 = vset.pattern.permute.xlu2 %v861_v21 }
  0x2f   :  { %133 = vmatmul.f32.vlgmr.msra.gmra.mxu2 %v65_v19  ;;  %556 = vperm.xlu2 %740, %v538_v20  }
  0x30   :  { %742 = vset.pattern.permute.xlu1 %v861_v21  ;;  %741 = vset.pattern.permute.xlu0 %v861_v21 }
  0x31   :  { %566 = vperm.xlu1 %742, %v540_v22   ;;  %561 = vperm.xlu0 %741, %v539_v23  }
  0x34   :  { %112 = vmatmul.f32.gmra.mxu0 %v58_v24 }
  0x35   :  { %148 = vmatmul.f32.gmra.mxu3 %v70_v25  ;;  %124 = vmatmul.f32.gmra.mxu1 %v62_v26 }
  0x37   :  { %136 = vmatmul.f32.gmra.mxu2 %v66_v27  ;;  %571 = vperm.xlu2 %740, %v541_v28  }
  0x39   :  { %581 = vperm.xlu1 %742, %v543_v29   ;;  %596 = vperm.xlu0 %741, %v546_v30   ;;  %v1077_v30 = vld [vmem:[%s1399_s5] ss:$0 sm:$0xff] }
  0x3c   :  { %115 = vmatmul.f32.gmra.mxu0 %v59_v31 }
  0x3d   :  { %151 = vmatmul.f32.gmra.mxu3 %v71_v32  ;;  %127 = vmatmul.f32.gmra.mxu1 %v63_v33 }
  0x3f   :  { %139 = vmatmul.f32.gmra.mxu2 %v67_v34  ;;  %576 = vperm.xlu2 %740, %v542_v35  }
  0x41   :  { %591 = vperm.xlu1 %742, %v545_v36   ;;  %611 = vperm.xlu0 %741, %v549_v37  }
  0x44   :  { %118 = vmatmul.f32.gmra.mxu0 %v60_v38 }
  0x45   :  { %154 = vmatmul.f32.gmra.mxu3 %v72_v39  ;;  %130 = vmatmul.f32.gmra.mxu1 %v64_v40 }
  0x47   :  { %142 = vmatmul.f32.gmra.mxu2 %v68_v41  ;;  %586 = vperm.xlu2 %740, %v544_v42  }
  0x49   :  { %606 = vperm.xlu1 %742, %v548_v43  }
  0x4f   :  { %601 = vperm.xlu2 %740, %v547_v44  }
  0x57   :  { %616 = vperm.xlu2 %740, %v550_v45  }
  0x89   :  { %v1050_v15 = vpop.permute.xlu2 %556 }
  0x91   :  { %v1052_v16 = vpop.permute.xlu2 %571 }
  0x99   :  { %v1054_v17 = vpop.permute.xlu2 %576 }
  0xa1   :  { %v1058_v19 = vpop.permute.xlu2 %586 }
  0xa3   :  { %v1056_v18 = vpop.permute.xlu0 %561  ;;  %v1060_v20 = vpop.permute.xlu1 %566 }
  0xa9   :  { %v110_v47 = vpop.f32.mrf.mxu0  ;;  %v1064_v22 = vpop.permute.xlu2 %601 }
  0xaa   :  { %v1002_v48 = vadd.f32 %v743_v46, %v110_v47  ;;  %v122_v49 = vpop.f32.mrf.mxu1 }
  0xab   :  { %v1004_v50 = vadd.f32 %v743_v46, %v122_v49  ;;  %v1062_v21 = vpop.permute.xlu0 %596  ;;  %v1066_v23 = vpop.permute.xlu1 %581 }
  0xac   :  { %158 = vadd.xlane.f32.xlu0 %v1002_v48 }
  0xad   :  { %166 = vadd.xlane.f32.xlu2 %v1004_v50 }
  0xb0   :  { %v146_v51 = vpop.f32.mrf.mxu3 }
  0xb1   :  { %v1008_v52 = vadd.f32 %v743_v46, %v146_v51  ;;  %v113_v54 = vpop.f32.mrf.mxu0  ;;  %v1070_v25 = vpop.permute.xlu2 %616 }
  0xb2   :  { %v134_v53 = vpop.f32.mrf.mxu2  ;;  %v125_v56 = vpop.f32.mrf.mxu1  ;;  %v1014_v57 = vadd.f32 %v743_v46, %v113_v54 }
  0xb3   :  { %v1010_v55 = vadd.f32 %v743_v46, %v134_v53  ;;  %v1018_v60 = vadd.f32 %v743_v46, %v125_v56  ;;  %v1068_v24 = vpop.permute.xlu0 %611  ;;  %v1072_v26 = vpop.permute.xlu1 %591 }
  0xb4   :  { %182 = vadd.xlane.f32.xlu0 %v1008_v52 }
  0xb5   :  { %174 = vadd.xlane.f32.xlu2 %v1010_v55 }
  0xb8   :  { %v149_v58 = vpop.f32.mrf.mxu3 }
  0xb9   :  { %v1016_v59 = vadd.f32 %v743_v46, %v149_v58  ;;  %v116_v62 = vpop.f32.mrf.mxu0 }
  0xba   :  { %v137_v61 = vpop.f32.mrf.mxu2  ;;  %v1023_v63 = vadd.f32 %v743_v46, %v116_v62  ;;  %v128_v4 = vpop.f32.mrf.mxu1 }
  0xbb   :  { %184 = vadd.xlane.f32.xlu1 %v1016_v59  ;;  %v1025_v0 = vadd.f32 %v743_v46, %v137_v61  ;;  %v1034_v6 = vadd.f32 %v743_v46, %v128_v4  ;;  %v1089_v36 = vpop.permute.xlu1 %606 }
  0xbc   :  { %160 = vadd.xlane.f32.xlu0 %v1014_v57 }
  0xbd   :  { %168 = vadd.xlane.f32.xlu2 %v1018_v60 }
  0xc0   :  { %v152_v1 = vpop.f32.mrf.mxu3 }
  0xc1   :  { %v1027_v2 = vadd.f32 %v743_v46, %v152_v1  ;;  %v119_v9 = vpop.f32.mrf.mxu0 }
  0xc2   :  { %v140_v3 = vpop.f32.mrf.mxu2  ;;  %v1041_v11 = vadd.f32 %v743_v46, %v119_v9  ;;  %v131_v13 = vpop.f32.mrf.mxu1 }
  0xc3   :  { %162 = vadd.xlane.f32.xlu1 %v1023_v63  ;;  %v1032_v5 = vadd.f32 %v743_v46, %v140_v3  ;;  %v1047_v14 = vadd.f32 %v743_v46, %v131_v13 }
  0xc4   :  { %176 = vadd.xlane.f32.xlu0 %v1025_v0 }
  0xc5   :  { %186 = vadd.xlane.f32.xlu2 %v1027_v2 }
  0xc8   :  { %v155_v10 = vpop.f32.mrf.mxu3 }
  0xc9   :  { %v1043_v12 = vadd.f32 %v743_v46, %v155_v10 }
  0xca   :  { %v143_v7 = vpop.f32.mrf.mxu2 }
  0xcb   :  { %v1036_v8 = vadd.f32 %v743_v46, %v143_v7  ;;  %178 = vadd.xlane.f32.xlu1 %v1032_v5 }
  0xcc   :  { %170 = vadd.xlane.f32.xlu0 %v1034_v6 }
  0xcd   :  { %180 = vadd.xlane.f32.xlu2 %v1036_v8 }
  0xd3   :  { %164 = vadd.xlane.f32.xlu1 %v1041_v11 }
  0xd4   :  { %188 = vadd.xlane.f32.xlu0 %v1043_v12 }
  0xdb   :  { %172 = vadd.xlane.f32.xlu1 %v1047_v14 }
 0x11f   :  { %v159_v27 = vpop.xlane.xlu0 %158 }
 0x120   :  { %v167_v28 = vpop.xlane.xlu2 %166  ;;  %v190_v29 = vmul.f32 0.03125, %v159_v27 }
 0x121   :  { %v194_v31 = vmul.f32 0.03125, %v167_v28 }
 0x122   :  { %v1080_v32 = vsub.f32 %v1002_v48, %v190_v29 }
 0x123   :  { %v1083_v33 = vsub.f32 %v1004_v50, %v194_v31 }
 0x124   :  { %v226_v34 = vmul.f32 %v1077_v30, %v1080_v32 }
 0x125   :  { %v230_v35 = vmul.f32 %v1077_v30, %v1083_v33 }
 0x126   :  { %v242_v37 = vmul.f32 %v226_v34, %v226_v34 }
 0x127   :  { %v183_v38 = vpop.xlane.xlu0 %182  ;;  %v246_v39 = vmul.f32 %v230_v35, %v230_v35 }
 0x128   :  { %v175_v40 = vpop.xlane.xlu2 %174  ;;  %v202_v41 = vmul.f32 0.03125, %v183_v38  ;;  %258 = vadd.xlane.f32.xlu1 %v242_v37 }
 0x129   :  { %v198_v42 = vmul.f32 0.03125, %v175_v40  ;;  %266 = vadd.xlane.f32.xlu2 %v246_v39 }
 0x12a   :  { %v1092_v43 = vsub.f32 %v1008_v52, %v202_v41 }
 0x12b   :  { %v1095_v44 = vsub.f32 %v1010_v55, %v198_v42 }
 0x12c   :  { %v238_v45 = vmul.f32 %v1077_v30, %v1092_v43 }
 0x12d   :  { %v234_v46 = vmul.f32 %v1077_v30, %v1095_v44 }
 0x12e   :  { %v185_v47 = vpop.xlane.xlu1 %184  ;;  %v254_v48 = vmul.f32 %v238_v45, %v238_v45 }
 0x12f   :  { %v161_v49 = vpop.xlane.xlu0 %160  ;;  %v250_v50 = vmul.f32 %v234_v46, %v234_v46  ;;  %v203_v52 = vmul.f32 0.03125, %v185_v47 }
 0x130   :  { %v169_v51 = vpop.xlane.xlu2 %168  ;;  %v191_v53 = vmul.f32 0.03125, %v161_v49  ;;  %282 = vadd.xlane.f32.xlu1 %v254_v48 }
 0x131   :  { %v195_v54 = vmul.f32 0.03125, %v169_v51  ;;  %274 = vadd.xlane.f32.xlu0 %v250_v50  ;;  %v1112_v62 = vsub.f32 %v1016_v59, %v203_v52 }
 0x132   :  { %v1102_v56 = vsub.f32 %v1014_v57, %v191_v53 }
 0x133   :  { %v1105_v55 = vsub.f32 %v1018_v60, %v195_v54  ;;  %v239_v27 = vmul.f32 %v1077_v30, %v1112_v62 }
 0x134   :  { %v227_v58 = vmul.f32 %v1077_v30, %v1102_v56 }
 0x135   :  { %v231_v61 = vmul.f32 %v1077_v30, %v1105_v55  ;;  %v255_v34 = vmul.f32 %v239_v27, %v239_v27 }
 0x136   :  { %v163_v1 = vpop.xlane.xlu1 %162  ;;  %v243_v3 = vmul.f32 %v227_v58, %v227_v58 }
 0x137   :  { %v192_v4 = vmul.f32 0.03125, %v163_v1  ;;  %v177_v7 = vpop.xlane.xlu0 %176  ;;  %v247_v9 = vmul.f32 %v231_v61, %v231_v61 }
 0x138   :  { %v187_v10 = vpop.xlane.xlu2 %186  ;;  %v199_v57 = vmul.f32 0.03125, %v177_v7  ;;  %260 = vadd.xlane.f32.xlu2 %v243_v3 }
 0x139   :  { %v1115_v60 = vsub.f32 %v1023_v63, %v192_v4  ;;  %268 = vadd.xlane.f32.xlu0 %v247_v9  ;;  %v204_v59 = vmul.f32 0.03125, %v187_v10 }
 0x13a   :  { %v1118_v13 = vsub.f32 %v1025_v0, %v199_v57 }
 0x13b   :  { %v228_v28 = vmul.f32 %v1077_v30, %v1115_v60  ;;  %v1127_v63 = vsub.f32 %v1027_v2, %v204_v59  ;;  %v551_v59 = vld [vmem:[%s1400_s6 + $0x68] sm:$0xff] }
 0x13c   :  { %v235_v29 = vmul.f32 %v1077_v30, %v1118_v13 }
 0x13d   :  { %v244_v0 = vmul.f32 %v228_v28, %v228_v28  ;;  %v240_v46 = vmul.f32 %v1077_v30, %v1127_v63 }
 0x13e   :  { %v179_v31 = vpop.xlane.xlu1 %178  ;;  %v251_v35 = vmul.f32 %v235_v29, %v235_v29 }
 0x13f   :  { %v200_v37 = vmul.f32 0.03125, %v179_v31  ;;  %v171_v38 = vpop.xlane.xlu0 %170 }
 0x140   :  { %v181_v39 = vpop.xlane.xlu2 %180  ;;  %v196_v40 = vmul.f32 0.03125, %v171_v38  ;;  %284 = vadd.xlane.f32.xlu2 %v255_v34  ;;  %276 = vadd.xlane.f32.xlu1 %v251_v35 }
 0x141   :  { %v1130_v41 = vsub.f32 %v1032_v5, %v200_v37  ;;  %262 = vadd.xlane.f32.xlu0 %v244_v0  ;;  %v201_v45 = vmul.f32 0.03125, %v181_v39 }
 0x142   :  { %v1133_v42 = vsub.f32 %v1034_v6, %v196_v40  ;;  %v256_v6 = vmul.f32 %v240_v46, %v240_v46 }
 0x143   :  { %v236_v2 = vmul.f32 %v1077_v30, %v1130_v41  ;;  %v1142_v5 = vsub.f32 %v1036_v8, %v201_v45 }
 0x144   :  { %v232_v47 = vmul.f32 %v1077_v30, %v1133_v42 }
 0x145   :  { %v252_v49 = vmul.f32 %v236_v2, %v236_v2  ;;  %v237_v58 = vmul.f32 %v1077_v30, %v1142_v5 }
 0x146   :  { %v165_v48 = vpop.xlane.xlu1 %164  ;;  %v248_v50 = vmul.f32 %v232_v47, %v232_v47 }
 0x147   :  { %v193_v51 = vmul.f32 0.03125, %v165_v48  ;;  %v189_v53 = vpop.xlane.xlu0 %188  ;;  %v253_v7 = vmul.f32 %v237_v58, %v237_v58 }
 0x148   :  { %278 = vadd.xlane.f32.xlu2 %v252_v49  ;;  %270 = vadd.xlane.f32.xlu1 %v248_v50  ;;  %v205_v52 = vmul.f32 0.03125, %v189_v53 }
 0x149   :  { %v1145_v54 = vsub.f32 %v1041_v11, %v193_v51  ;;  %286 = vadd.xlane.f32.xlu0 %v256_v6 }
 0x14a   :  { %v1152_v1 = vsub.f32 %v1043_v12, %v205_v52  ;;  %v552_v12 = vld [vmem:[%s1400_s6 + $0x70] sm:$0xff] }
 0x14b   :  { %v229_v61 = vmul.f32 %v1077_v30, %v1145_v54 }
 0x14c   :  { %v241_v11 = vmul.f32 %v1077_v30, %v1152_v1 }
 0x14d   :  { %v245_v3 = vmul.f32 %v229_v61, %v229_v61 }
 0x14e   :  { %v173_v8 = vpop.xlane.xlu1 %172  ;;  %v257_v27 = vmul.f32 %v241_v11, %v241_v11 }
 0x14f   :  { %v197_v4 = vmul.f32 0.03125, %v173_v8 }
 0x150   :  { %264 = vadd.xlane.f32.xlu1 %v245_v3 }
 0x151   :  { %v1155_v9 = vsub.f32 %v1047_v14, %v197_v4  ;;  %280 = vadd.xlane.f32.xlu0 %v253_v7  ;;  %v553_v14 = vld [vmem:[%s1400_s6 + $0x78] sm:$0xff] }
 0x153   :  { %v233_v10 = vmul.f32 %v1077_v30, %v1155_v9 }
 0x155   :  { %v249_v57 = vmul.f32 %v233_v10, %v233_v10 }
 0x157   :  { %272 = vadd.xlane.f32.xlu2 %v249_v57 }
 0x158   :  { %288 = vadd.xlane.f32.xlu1 %v257_v27 }
 0x165   :  { %626 = vperm.xlu0 %741, %v552_v12   ;;  %v1181_v12 = vld [vmem:[#allocation5] ss:$0 sm:$0xff] }
 0x16f   :  { %631 = vperm.xlu2 %740, %v553_v14  }
 0x171   :  { %621 = vperm.xlu1 %742, %v551_v59  }
 0x19b   :  { %v259_v30 = vpop.xlane.xlu1 %258 }
 0x19c   :  { %v267_v28 = vpop.xlane.xlu2 %266  ;;  %v290_v29 = vmul.f32 0.03125, %v259_v30 }
 0x19d   :  { %v294_v31 = vmul.f32 0.03125, %v267_v28 }
 0x19e   :  { %v306_v34 = vadd.f32 1e-05, %v290_v29  ;;  %v1189_v29 = vld [vmem:[%s1398_s4] ss:$0 sm:$0xff]  ;;  %s862_s4 = smov [#allocation7]  }
 0x19f   :  { %v310_v35 = vadd.f32 1e-05, %v294_v31  ;;  %s670_s8 = sshll.u32 %s862_s4, 4  ;;  %s671_s8 = int_to_ptr.vmem [resolvable:$true] %s670_s8 }
 0x1a0   :  { %747 = vrsqrt.f32 %v306_v34  ;;  %vm328_vm2 = vweird.f32 %v306_v34 }
 0x1a1   :  { %749 = vrsqrt.f32 %v310_v35  ;;  %vm368_vm3 = vweird.f32 %v310_v35 }
 0x1a3   :  { %v283_v37 = vpop.xlane.xlu1 %282 }
 0x1a4   :  { %v302_v38 = vmul.f32 0.03125, %v283_v37  ;;  %v275_v0 = vpop.xlane.xlu0 %274 }
 0x1a5   :  { %v298_v39 = vmul.f32 0.03125, %v275_v0 }
 0x1a6   :  { %v748_v40 = vpop.eup %747  ;;  %v1170_v45 = vadd.f32 1e-05, %v302_v38 }
 0x1a7   :  { %v750_v46 = vpop.eup %749  ;;  %v323_v2 = vmul.f32 %v748_v40, %v306_v34  ;;  %v1172_v47 = vadd.f32 1e-05, %v298_v39  ;;  %vm329_vm0 = vweird.f32 %v748_v40 }
 0x1a8   :  { %v363_v48 = vmul.f32 %v750_v46, %v310_v35  ;;  %751 = vrsqrt.f32 %v1170_v45  ;;  %vm369_vm1 = vweird.f32 %v750_v46  ;;  %vm330_vm4 = vmor %vm328_vm2, %vm329_vm0  ;;  %vm448_vm6 = vweird.f32 %v1170_v45 }
 0x1a9   :  { %v324_v49 = vmul.f32 %v748_v40, %v323_v2  ;;  %753 = vrsqrt.f32 %v1172_v47  ;;  %vm370_vm5 = vmor %vm368_vm3, %vm369_vm1  ;;  %vm408_vm8 = vweird.f32 %v1172_v47 }
 0x1aa   :  { %v364_v50 = vmul.f32 %v750_v46, %v363_v48 }
 0x1ab   :  { %v325_v51 = vmul.f32 0.5, %v324_v49  ;;  %v261_v53 = vpop.xlane.xlu2 %260 }
 0x1ac   :  { %v365_v6 = vmul.f32 0.5, %v364_v50  ;;  %v291_v52 = vmul.f32 0.03125, %v261_v53  ;;  %v269_v58 = vpop.xlane.xlu0 %268 }
 0x1ad   :  { %v326_v61 = vsub.f32 1.5, %v325_v51  ;;  %v295_v8 = vmul.f32 0.03125, %v269_v58 }
 0x1ae   :  { %v752_v3 = vpop.eup %751  ;;  %v366_v4 = vsub.f32 1.5, %v365_v6  ;;  %v1176_v7 = vadd.f32 1e-05, %v291_v52 }
 0x1af   :  { %v754_v11 = vpop.eup %753  ;;  %v327_v10 = vmul.f32 %v748_v40, %v326_v61  ;;  %v443_v57 = vmul.f32 %v752_v3, %v1170_v45  ;;  %v1179_v27 = vadd.f32 1e-05, %v295_v8  ;;  %vm449_vm7 = vweird.f32 %v752_v3 }
 0x1b0   :  { %v367_v14 = vmul.f32 %v750_v46, %v366_v4  ;;  %v403_v59 = vmul.f32 %v754_v11, %v1172_v47  ;;  %755 = vrsqrt.f32 %v1176_v7  ;;  %vm409_vm9 = vweird.f32 %v754_v11  ;;  %vm450_vm10 = vmor %vm448_vm6, %vm449_vm7 }
 0x1b1   :  { %v331_v30 = vsel %vm330_vm4, %v748_v40, %v327_v10  ;;  %v444_v28 = vmul.f32 %v752_v3, %v443_v57  ;;  %757 = vrsqrt.f32 %v1179_v27  ;;  %vm410_vm11 = vmor %vm408_vm8, %vm409_vm9  ;;  %vm338_vm12 = vweird.f32 %v1176_v7 }
 0x1b2   :  { %v371_v31 = vsel %vm370_vm5, %v750_v46, %v367_v14  ;;  %v482_v34 = vmul.f32 %v331_v30, %v1080_v32  ;;  %v404_v37 = vmul.f32 %v754_v11, %v403_v59  ;;  %vm378_vm13 = vweird.f32 %v1179_v27 }
 0x1b3   :  { %v486_v35 = vmul.f32 %v371_v31, %v1083_v33  ;;  %v445_v38 = vmul.f32 0.5, %v444_v28  ;;  %v285_v0 = vpop.xlane.xlu2 %284  ;;  %v277_v39 = vpop.xlane.xlu1 %276 }
 0x1b4   :  { %v502_v40 = vmul.f32 %v1181_v12, %v482_v34  ;;  %v405_v2 = vmul.f32 0.5, %v404_v37  ;;  %v303_v48 = vmul.f32 0.03125, %v285_v0  ;;  %v299_v49 = vmul.f32 0.03125, %v277_v39  ;;  %v263_v50 = vpop.xlane.xlu0 %262 }
 0x1b5   :  { %v506_v51 = vmul.f32 %v1181_v12, %v486_v35  ;;  %v446_v53 = vsub.f32 1.5, %v445_v38  ;;  %v292_v59 = vmul.f32 0.03125, %v263_v50 }
 0x1b6   :  { %v756_v32 = vpop.eup %755  ;;  %v522_v33 = vadd.f32 %v1189_v29, %v502_v40  ;;  %v406_v46 = vsub.f32 1.5, %v405_v2  ;;  %v1198_v6 = vadd.f32 1e-05, %v303_v48  ;;  %v1202_v4 = vadd.f32 1e-05, %v299_v49 }
 0x1b7   :  { %v758_v52 = vpop.eup %757  ;;  %v526_v58 = vadd.f32 %v1189_v29, %v506_v51  ;;  %v447_v61 = vmul.f32 %v752_v3, %v446_v53  ;;  %v333_v8 = vmul.f32 %v756_v32, %v1176_v7  ;;  %v1218_v0 = vadd.f32 1e-05, %v292_v59 }
 0x1b8   :  { %v634_v10 = vmul.f32 %v1050_v15, %v522_v33  ;;  %v407_v57 = vmul.f32 %v754_v11, %v406_v46  ;;  %v373_v14 = vmul.f32 %v758_v52, %v1179_v27  ;;  %759 = vrsqrt.f32 %v1198_v6 }
 0x1b9   :  { %v638_v30 = vmul.f32 %v1054_v17, %v526_v58  ;;  %v451_v28 = vsel %vm450_vm10, %v752_v3, %v447_v61  ;;  %v334_v31 = vmul.f32 %v756_v32, %v333_v8  ;;  %761 = vrsqrt.f32 %v1202_v4 }
 0x1ba   :  { %650 = vst [vmem:[#allocation7] sm:$0xff] %v634_v10  ;;  %v494_v34 = vmul.f32 %v451_v28, %v1092_v43  ;;  %v411_v15 = vsel %vm410_vm11, %v754_v11, %v407_v57  ;;  %v374_v45 = vmul.f32 %v758_v52, %v373_v14  ;;  %vm339_vm14 = vweird.f32 %v756_v32 }
 0x1bb   :  { %654 = vst [vmem:[#allocation7 + $0x20] sm:$0xff] %v638_v30  ;;  %v490_v37 = vmul.f32 %v411_v15, %v1095_v44  ;;  %v335_v35 = vmul.f32 0.5, %v334_v31  ;;  %v279_v17 = vpop.xlane.xlu2 %278  ;;  %v271_v47 = vpop.xlane.xlu1 %270  ;;  %vm379_vm15 = vweird.f32 %v758_v52  ;;  %763 = vrsqrt.f32 %v1218_v0  ;;  %vm340_vm0 = vmor %vm338_vm12, %vm339_vm14 }
 0x1bc   :  { %v514_v3 = vmul.f32 %v1181_v12, %v494_v34  ;;  %v375_v38 = vmul.f32 0.5, %v374_v45  ;;  %v300_v43 = vmul.f32 0.03125, %v279_v17  ;;  %v296_v40 = vmul.f32 0.03125, %v271_v47  ;;  %v287_v2 = vpop.xlane.xlu0 %286  ;;  %vm380_vm1 = vmor %vm378_vm13, %vm379_vm15 }
 0x1bd   :  { %v510_v11 = vmul.f32 %v1181_v12, %v490_v37  ;;  %v336_v39 = vsub.f32 1.5, %v335_v35  ;;  %v304_v8 = vmul.f32 0.03125, %v287_v2  ;;  %vm418_vm2 = vweird.f32 %v1202_v4 }
 0x1be   :  { %v534_v44 = vadd.f32 %v1189_v29, %v514_v3  ;;  %v376_v48 = vsub.f32 1.5, %v375_v38  ;;  %v1223_v49 = vpop.eup %759  ;;  %v1226_v53 = vadd.f32 1e-05, %v300_v43  ;;  %v1228_v33 = vadd.f32 1e-05, %v296_v40 }
 0x1bf   :  { %v530_v50 = vadd.f32 %v1189_v29, %v510_v11  ;;  %v337_v51 = vmul.f32 %v756_v32, %v336_v39  ;;  %v453_v61 = vmul.f32 %v1223_v49, %v1198_v6  ;;  %v1235_v10 = vpop.eup %761  ;;  %vm348_vm3 = vweird.f32 %v1218_v0 }
 0x1c0   :  { %v646_v46 = vmul.f32 %v1070_v25, %v534_v44  ;;  %v377_v58 = vmul.f32 %v758_v52, %v376_v48  ;;  %765 = vrsqrt.f32 %v1226_v53  ;;  %v413_v30 = vmul.f32 %v1235_v10, %v1202_v4 }
 0x1c1   :  { %v642_v57 = vmul.f32 %v1062_v21, %v530_v50  ;;  %v341_v14 = vsel %vm340_vm0, %v756_v32, %v337_v51  ;;  %v454_v59 = vmul.f32 %v1223_v49, %v453_v61  ;;  %767 = vrsqrt.f32 %v1228_v33  ;;  %v1248_v32 = vpop.eup %763 }
 0x1c2   :  { %662 = vst [vmem:[#allocation7 + $0x60] sm:$0xff] %v646_v46  ;;  %v483_v25 = vmul.f32 %v341_v14, %v1102_v56  ;;  %v381_v7 = vsel %vm380_vm1, %v758_v52, %v377_v58  ;;  %v414_v34 = vmul.f32 %v1235_v10, %v413_v30  ;;  %v1252_v56 = vadd.f32 1e-05, %v304_v8 }
 0x1c3   :  { %658 = vst [vmem:[#allocation7 + $0x40] sm:$0xff] %v642_v57  ;;  %v487_v28 = vmul.f32 %v381_v7, %v1105_v55  ;;  %v265_v21 = vpop.xlane.xlu1 %264  ;;  %v455_v31 = vmul.f32 0.5, %v454_v59  ;;  %v343_v15 = vmul.f32 %v1248_v32, %v1218_v0  ;;  %vm419_vm4 = vweird.f32 %v1235_v10 }
 0x1c4   :  { %v503_v27 = vmul.f32 %v1181_v12, %v483_v25  ;;  %v293_v55 = vmul.f32 0.03125, %v265_v21  ;;  %v415_v37 = vmul.f32 0.5, %v414_v34  ;;  %769 = vrsqrt.f32 %v1252_v56  ;;  %v281_v40 = vpop.xlane.xlu0 %280  ;;  %vm420_vm9 = vmor %vm418_vm2, %vm419_vm4 }
 0x1c5   :  { %v507_v52 = vmul.f32 %v1181_v12, %v487_v28  ;;  %v456_v47 = vsub.f32 1.5, %v455_v31  ;;  %v344_v3 = vmul.f32 %v1248_v32, %v343_v15  ;;  %vm428_vm5 = vweird.f32 %v1226_v53 }
 0x1c6   :  { %v523_v45 = vadd.f32 %v1189_v29, %v503_v27  ;;  %v1261_v35 = vpop.eup %765  ;;  %v1265_v38 = vadd.f32 1e-05, %v293_v55  ;;  %v416_v11 = vsub.f32 1.5, %v415_v37  ;;  %vm459_vm6 = vweird.f32 %v1223_v49 }
 0x1c7   :  { %v527_v17 = vadd.f32 %v1189_v29, %v507_v52  ;;  %v423_v39 = vmul.f32 %v1261_v35, %v1226_v53  ;;  %v1271_v2 = vpop.eup %767  ;;  %v345_v48 = vmul.f32 0.5, %v344_v3  ;;  %vm349_vm7 = vweird.f32 %v1248_v32 }
 0x1c8   :  { %v635_v43 = vmul.f32 %v1056_v18, %v523_v45  ;;  %771 = vrsqrt.f32 %v1265_v38  ;;  %v417_v18 = vmul.f32 %v1235_v10, %v416_v11  ;;  %v383_v51 = vmul.f32 %v1271_v2, %v1228_v33  ;;  %vm350_vm12 = vmor %vm348_vm3, %vm349_vm7 }
 0x1c9   :  { %v639_v44 = vmul.f32 %v1066_v23, %v527_v17  ;;  %v424_v50 = vmul.f32 %v1261_v35, %v423_v39  ;;  %vm388_vm8 = vweird.f32 %v1228_v33  ;;  %v1284_v46 = vmul.f32 %v1223_v49, %v456_v47 }
 0x1ca   :  { %651 = vst [vmem:[#allocation7 + $0x8] sm:$0xff] %v635_v43  ;;  %v273_v23 = vpop.xlane.xlu2 %272  ;;  %v346_v58 = vsub.f32 1.5, %v345_v48  ;;  %v301_v61 = vmul.f32 0.03125, %v281_v40  ;;  %v1290_v14 = vpop.eup %769  ;;  %vm458_vm10 = vweird.f32 %v1198_v6  ;;  %v421_v25 = vsel %vm420_vm9, %v1235_v10, %v417_v18 }
 0x1cb   :  { %655 = vst [vmem:[#allocation7 + $0x28] sm:$0xff] %v639_v44  ;;  %v297_v8 = vmul.f32 0.03125, %v273_v23  ;;  %v289_v57 = vpop.xlane.xlu1 %288  ;;  %v425_v7 = vmul.f32 0.5, %v424_v50  ;;  %vm429_vm11 = vweird.f32 %v1261_v35  ;;  %v384_v59 = vmul.f32 %v1271_v2, %v383_v51  ;;  %vm1340_vm1 = vmor %vm458_vm10, %vm459_vm6 }
 0x1cc   :  { %v491_v30 = vmul.f32 %v421_v25, %v1118_v13  ;;  %v347_v4 = vmul.f32 %v1248_v32, %v346_v58  ;;  %v463_v28 = vmul.f32 %v1290_v14, %v1252_v56  ;;  %v305_v21 = vmul.f32 0.03125, %v289_v57  ;;  %vm430_vm14 = vmor %vm428_vm5, %vm429_vm11 }
 0x1cd   :  { %v426_v27 = vsub.f32 1.5, %v425_v7  ;;  %v385_v10 = vmul.f32 0.5, %v384_v59  ;;  %vm389_vm13 = vweird.f32 %v1271_v2  ;;  %v1305_v31 = vadd.f32 1e-05, %v301_v61 }
 0x1ce   :  { %v772_v34 = vpop.eup %771  ;;  %v511_v13 = vmul.f32 %v1181_v12, %v491_v30  ;;  %v351_v52 = vsel %vm350_vm12, %v1248_v32, %v347_v4  ;;  %v464_v15 = vmul.f32 %v1290_v14, %v463_v28  ;;  %v1310_v55 = vadd.f32 1e-05, %v297_v8  ;;  %vm390_vm15 = vmor %vm388_vm8, %vm389_vm13 }
 0x1cf   :  { %v484_v45 = vmul.f32 %v351_v52, %v1115_v60  ;;  %v427_v0 = vmul.f32 %v1261_v35, %v426_v27  ;;  %v386_v37 = vsub.f32 1.5, %v385_v10  ;;  %v353_v17 = vmul.f32 %v772_v34, %v1265_v38 }
 0x1d0   :  { %v531_v47 = vadd.f32 %v1189_v29, %v511_v13  ;;  %v465_v3 = vmul.f32 0.5, %v464_v15  ;;  %773 = vrsqrt.f32 %v1305_v31  ;;  %v1321_v32 = vadd.f32 1e-05, %v305_v21 }
 0x1d1   :  { %v504_v43 = vmul.f32 %v1181_v12, %v484_v45  ;;  %v431_v60 = vsel %vm430_vm14, %v1261_v35, %v427_v0  ;;  %v387_v11 = vmul.f32 %v1271_v2, %v386_v37  ;;  %v354_v39 = vmul.f32 %v772_v34, %v353_v17 }
 0x1d2   :  { %v643_v40 = vmul.f32 %v1064_v22, %v531_v47  ;;  %v492_v44 = vmul.f32 %v431_v60, %v1130_v41  ;;  %v466_v53 = vsub.f32 1.5, %v465_v3  ;;  %vm469_vm0 = vweird.f32 %v1290_v14 }
 0x1d3   :  { %v524_v48 = vadd.f32 %v1189_v29, %v504_v43  ;;  %v391_v18 = vsel %vm390_vm15, %v1271_v2, %v387_v11  ;;  %v355_v35 = vmul.f32 0.5, %v354_v39  ;;  %775 = vrsqrt.f32 %v1310_v55 }
 0x1d4   :  { %659 = vst [vmem:[#allocation7 + $0x48] sm:$0xff] %v643_v40  ;;  %v512_v41 = vmul.f32 %v1181_v12, %v492_v44  ;;  %v488_v33 = vmul.f32 %v391_v18, %v1133_v42  ;;  %v467_v50 = vmul.f32 %v1290_v14, %v466_v53  ;;  %vm468_vm2 = vweird.f32 %v1252_v56 }
 0x1d5   :  { %v636_v2 = vmul.f32 %v1060_v20, %v524_v48  ;;  %vm470_vm3 = vmor %vm468_vm2, %vm469_vm0  ;;  %v356_v51 = vsub.f32 1.5, %v355_v35  ;;  %vm359_vm4 = vweird.f32 %v772_v34  ;;  %777 = vrsqrt.f32 %v1321_v32 }
 0x1d6   :  { %v774_v6 = vpop.eup %773  ;;  %v532_v23 = vadd.f32 %v1189_v29, %v512_v41  ;;  %v508_v58 = vmul.f32 %v1181_v12, %v488_v33  ;;  %v471_v61 = vsel %vm470_vm3, %v1290_v14, %v467_v50  ;;  %v461_v42 = vsel %vm1340_vm1, %v1223_v49, %v1284_v46  ;;  %v632_v33 = vpop.permute.xlu2 %631 }
 0x1d7   :  { %652 = vst [vmem:[#allocation7 + $0x10] sm:$0xff] %v636_v2  ;;  %v357_v56 = vmul.f32 %v772_v34, %v356_v51  ;;  %vm358_vm5 = vweird.f32 %v1265_v38  ;;  %v433_v20 = vmul.f32 %v774_v6, %v1305_v31  ;;  %v496_v8 = vmul.f32 %v471_v61, %v1127_v63  ;;  %v627_v63 = vpop.permute.xlu0 %626 }
 0x1d8   :  { %v644_v57 = vmul.f32 %v1089_v36, %v532_v23  ;;  %v528_v25 = vadd.f32 %v1189_v29, %v508_v58  ;;  %vm360_vm6 = vmor %vm358_vm5, %vm359_vm4  ;;  %v495_v49 = vmul.f32 %v461_v42, %v1112_v62  ;;  %vm439_vm7 = vweird.f32 %v774_v6 }
 0x1d9   :  { %v776_v7 = vpop.eup %775  ;;  %v361_v14 = vsel %vm360_vm6, %v772_v34, %v357_v56  ;;  %v434_v59 = vmul.f32 %v774_v6, %v433_v20  ;;  %v516_v30 = vmul.f32 %v1181_v12, %v496_v8  ;;  %vm438_vm8 = vweird.f32 %v1305_v31 }
 0x1da   :  { %660 = vst [vmem:[#allocation7 + $0x50] sm:$0xff] %v644_v57  ;;  %v640_v46 = vmul.f32 %v1058_v19, %v528_v25  ;;  %v485_v38 = vmul.f32 %v361_v14, %v1145_v54  ;;  %v393_v4 = vmul.f32 %v776_v7, %v1310_v55  ;;  %v515_v19 = vmul.f32 %v1181_v12, %v495_v49  ;;  %vm440_vm9 = vmor %vm438_vm8, %vm439_vm7 }
 0x1db   :  { %v778_v28 = vpop.eup %777  ;;  %v435_v36 = vmul.f32 0.5, %v434_v59  ;;  %v536_v21 = vadd.f32 %v1189_v29, %v516_v30  ;;  %vm399_vm10 = vweird.f32 %v776_v7  ;;  %vm398_vm11 = vweird.f32 %v1310_v55 }
 0x1dc   :  { %656 = vst [vmem:[#allocation7 + $0x30] sm:$0xff] %v640_v46  ;;  %v505_v27 = vmul.f32 %v1181_v12, %v485_v38  ;;  %v394_v10 = vmul.f32 %v776_v7, %v393_v4  ;;  %v473_v34 = vmul.f32 %v778_v28, %v1321_v32  ;;  %v535_v3 = vadd.f32 %v1189_v29, %v515_v19  ;;  %vm400_vm13 = vmor %vm398_vm11, %vm399_vm10 }
 0x1dd   :  { %v436_v13 = vsub.f32 1.5, %v435_v36  ;;  %v648_v62 = vmul.f32 %v627_v63, %v536_v21  ;;  %vm479_vm12 = vweird.f32 %v778_v28  ;;  %vm478_vm14 = vweird.f32 %v1321_v32 }
 0x1de   :  { %v525_v54 = vadd.f32 %v1189_v29, %v505_v27  ;;  %v395_v52 = vmul.f32 0.5, %v394_v10  ;;  %v474_v15 = vmul.f32 %v778_v28, %v473_v34  ;;  %vm480_vm15 = vmor %vm478_vm14, %vm479_vm12 }
 0x1df   :  { %v437_v45 = vmul.f32 %v774_v6, %v436_v13  ;;  %664 = vst [vmem:[#allocation7 + $0x70] sm:$0xff] %v648_v62 }
 0x1e0   :  { %v637_v0 = vmul.f32 %v1052_v16, %v525_v54  ;;  %v396_v37 = vsub.f32 1.5, %v395_v52  ;;  %v475_v17 = vmul.f32 0.5, %v474_v15 }
 0x1e1   :  { %v441_v47 = vsel %vm440_vm9, %v774_v6, %v437_v45 }
 0x1e2   :  { %653 = vst [vmem:[#allocation7 + $0x18] sm:$0xff] %v637_v0  ;;  %v493_v43 = vmul.f32 %v441_v47, %v1142_v5  ;;  %v397_v60 = vmul.f32 %v776_v7, %v396_v37  ;;  %v476_v11 = vsub.f32 1.5, %v475_v17 }
 0x1e3   :  { %v622_v39 = vpop.permute.xlu1 %621 }
 0x1e4   :  { %v647_v31 = vmul.f32 %v622_v39, %v535_v3  ;;  %v513_v16 = vmul.f32 %v1181_v12, %v493_v43  ;;  %v401_v40 = vsel %vm400_vm13, %v776_v7, %v397_v60  ;;  %v477_v44 = vmul.f32 %v778_v28, %v476_v11 }
 0x1e5   :  { %v489_v53 = vmul.f32 %v401_v40, %v1155_v9 }
 0x1e6   :  { %663 = vst [vmem:[#allocation7 + $0x68] sm:$0xff] %v647_v31  ;;  %v533_v55 = vadd.f32 %v1189_v29, %v513_v16  ;;  %v481_v48 = vsel %vm480_vm15, %v778_v28, %v477_v44 }
 0x1e7   :  { %v509_v5 = vmul.f32 %v1181_v12, %v489_v53  ;;  %v497_v18 = vmul.f32 %v481_v48, %v1152_v1 }
 0x1e8   :  { %v645_v35 = vmul.f32 %v1068_v24, %v533_v55 }
 0x1e9   :  { %v529_v22 = vadd.f32 %v1189_v29, %v509_v5  ;;  %v517_v41 = vmul.f32 %v1181_v12, %v497_v18 }
 0x1ea   :  { %661 = vst [vmem:[#allocation7 + $0x58] sm:$0xff] %v645_v35 }
 0x1eb   :  { %v641_v9 = vmul.f32 %v1072_v26, %v529_v22  ;;  %v537_v32 = vadd.f32 %v1189_v29, %v517_v41 }
 0x1ed   :  { %657 = vst [vmem:[#allocation7 + $0x38] sm:$0xff] %v641_v9  ;;  %v649_v1 = vmul.f32 %v632_v33, %v537_v32 }
 0x1ef   :  { %665 = vst [vmem:[#allocation7 + $0x78] sm:$0xff] %v649_v1 }
 0x1f0   :  { %678 = dma.vmem_to_hbm [thread:$0]  %s671_s8, 2048, %s673_s1, [#allocation4], %s858_s9, %s858_s9, %s859_s10  }
 0x1f1   :  { %855 = dma.done.wait [#allocation4], 2048  }
 0x1f2   :  { %856 = vsyncadd [#allocation4], 4294965248 }
 0x1f3   :  { %683 = vsyncpa [#allocation3], 1 }
 0x1f4   :  { %684 = vsyncpa [#allocation6], 1 }
 0x1f5   :  { %685 = vsyncpa [#allocation4], 1 }

</bundles_post_ra>
